<compile_context>
chip_gen: v5e
topology: v5e:2x2
jax: 0.10.0
libtpu: 0.0.40
codegen_flags: <defaults>
</compile_context>

<pallas_src>
import jax
import jax.numpy as jnp
from jax import lax
from jax.experimental import pallas as pl
from jax.experimental.pallas import tpu as pltpu


def attention_kernel(x_ref, w1_ref, b1_ref, w2_ref, b2_ref, emb_ref, annt_ref):
    x = x_ref[0]            # (S, D)  hidden_states for this batch element
    w1 = w1_ref[...]        # (A, D)  PyTorch layout
    w2 = w2_ref[...]        # (R, A)  PyTorch layout

    # u = tanh(x @ W1^T + b1): contract the shared D axis, no transpose needed.
    u = lax.dot_general(x, w1, (((1,), (1,)), ((), ())),
                        preferred_element_type=jnp.float32)
    u = jnp.tanh(u + b1_ref[...])                      # (S, A), b1 is (1, A)

    # scores^T computed directly as W2 ·_A u  -> (R, S); this fuses the permute.
    scores = lax.dot_general(w2, u, (((1,), (1,)), ((), ())),
                             preferred_element_type=jnp.float32)
    scores = scores + b2_ref[...]                      # (R, S), b2 is (R, 1)

    # Softmax over the sequence axis (lanes).
    m = jnp.max(scores, axis=-1, keepdims=True)
    e = jnp.exp(scores - m)
    denom = jnp.sum(e, axis=-1, keepdims=True)
    inv = pl.reciprocal(denom, approx=True)            # EUP vrcp
    inv = inv * (2.0 - denom * inv)                    # one Newton step -> f32 accuracy
    annt = e * inv                                     # (R, S)

    annt_ref[0] = annt.astype(annt_ref.dtype)
    # emb = annt @ hidden_states
    emb_ref[0] = jnp.dot(annt, x,
                         preferred_element_type=jnp.float32).astype(emb_ref.dtype)


def attention_forward(x, w1, b1, w2, b2):
    B, S, D = x.shape
    A = w1.shape[0]
    R = w2.shape[0]
    b1_2d = b1.reshape(1, A)
    b2_2d = b2.reshape(R, 1)

    emb, annt = pl.pallas_call(
        attention_kernel,
        out_shape=(
            jax.ShapeDtypeStruct((B, R, D), jnp.float32),
            jax.ShapeDtypeStruct((B, R, S), jnp.float32),
        ),
        grid_spec=pltpu.PrefetchScalarGridSpec(
            num_scalar_prefetch=0,
            grid=(B,),
            in_specs=[
                pl.BlockSpec((1, S, D), lambda b: (b, 0, 0)),   # x: one batch element per step
                pl.BlockSpec((A, D), lambda b: (0, 0)),          # W1 resident
                pl.BlockSpec((1, A), lambda b: (0, 0)),          # b1 resident
                pl.BlockSpec((R, A), lambda b: (0, 0)),          # W2 resident
                pl.BlockSpec((R, 1), lambda b: (0, 0)),          # b2 resident
            ],
            out_specs=(
                pl.BlockSpec((1, R, D), lambda b: (b, 0, 0)),    # emb_matrix
                pl.BlockSpec((1, R, S), lambda b: (b, 0, 0)),    # annt_matrix
            ),
        ),
        compiler_params=pltpu.CompilerParams(
            dimension_semantics=("parallel",),
        ),
    )(x, w1, b1_2d, w2, b2_2d)
    return emb, annt


def attention_reference(x, w1, b1, w2, b2):
    u = jnp.tanh(jnp.einsum("bsd,ad->bsa", x, w1) + b1)
    scores = jnp.einsum("bsa,ra->bsr", u, w2) + b2
    scores_t = jnp.transpose(scores, (0, 2, 1))          # (B, R, S)
    annt = jax.nn.softmax(scores_t, axis=2)
    emb = jnp.einsum("brs,bsd->brd", annt, x)
    return emb, annt


if __name__ == "__main__":
    # Shapes implied by the module: x is (batch, seq, 2*lstm_hidden).
    # Chosen lane-dense (S = D = 128) per perf review; still small.
    batch, seq = 2, 128
    lstm_hidden = 64                 # D = 2*lstm_hidden = 128
    attn_hidden, r_size = 64, 16
    D = 2 * lstm_hidden

    key = jax.random.PRNGKey(0)
    kx, kw1, kb1, kw2, kb2 = jax.random.split(key, 5)

    x = jax.random.normal(kx, (batch, seq, D), dtype=jnp.float32)

    # PyTorch-style Linear init: U(-1/sqrt(fan_in), 1/sqrt(fan_in))
    bound1 = 1.0 / jnp.sqrt(D)
    w1 = jax.random.uniform(kw1, (attn_hidden, D), jnp.float32, -bound1, bound1)
    b1 = jax.random.uniform(kb1, (attn_hidden,), jnp.float32, -bound1, bound1)
    bound2 = 1.0 / jnp.sqrt(attn_hidden)
    w2 = jax.random.uniform(kw2, (r_size, attn_hidden), jnp.float32, -bound2, bound2)
    b2 = jax.random.uniform(kb2, (r_size,), jnp.float32, -bound2, bound2)

    emb, annt = attention_forward(x, w1, b1, w2, b2)
    emb = jax.block_until_ready(emb)
    annt = jax.block_until_ready(annt)

    emb_ref, annt_ref = attention_reference(x, w1, b1, w2, b2)

    assert emb.shape == (batch, r_size, D)
    assert annt.shape == (batch, r_size, seq)
    assert jnp.allclose(annt, annt_ref, atol=1e-4, rtol=1e-4), "annt mismatch vs reference"
    assert jnp.allclose(emb, emb_ref, atol=1e-4, rtol=1e-4), "emb mismatch vs reference"
    assert jnp.allclose(jnp.sum(annt, axis=2), 1.0, atol=1e-4), "softmax rows must sum to 1"

    print("KERNEL_OK")
</pallas_src>

<mosaic_0001>
module attributes {stable_mosaic.version = 11 : i64} {
  func.func @attention_kernel(%arg0: i32, %arg1: memref<1x128x128xf32, #tpu.memory_space<vmem>>, %arg2: memref<64x128xf32, #tpu.memory_space<vmem>>, %arg3: memref<1x64xf32, #tpu.memory_space<vmem>>, %arg4: memref<16x64xf32, #tpu.memory_space<vmem>>, %arg5: memref<16x1xf32, #tpu.memory_space<vmem>>, %arg6: memref<1x16x128xf32, #tpu.memory_space<vmem>>, %arg7: memref<1x16x128xf32, #tpu.memory_space<vmem>>) attributes {dimension_semantics = [#tpu.dimension_semantics<parallel>], iteration_bounds = array<i64: 2>, scalar_prefetch = 0 : i64, scratch_operands = 0 : i64, tpu.core_type = #tpu.core_type<tc>, window_params = [{transform_indices = @transform_0, window_bounds = array<i64: 1, 128, 128>}, {pipeline_mode = #tpu.pipeline_mode<synchronous>, transform_indices = @transform_1, window_bounds = array<i64: 64, 128>}, {pipeline_mode = #tpu.pipeline_mode<synchronous>, transform_indices = @transform_2, window_bounds = array<i64: 1, 64>}, {pipeline_mode = #tpu.pipeline_mode<synchronous>, transform_indices = @transform_3, window_bounds = array<i64: 16, 64>}, {pipeline_mode = #tpu.pipeline_mode<synchronous>, transform_indices = @transform_4, window_bounds = array<i64: 16, 1>}, {transform_indices = @transform_5, window_bounds = array<i64: 1, 16, 128>}, {transform_indices = @transform_6, window_bounds = array<i64: 1, 16, 128>}]} {
    %c0 = arith.constant 0 : index
    %c0_0 = arith.constant 0 : index
    %c0_1 = arith.constant 0 : index
    %0 = vector.load %arg1[%c0, %c0_0, %c0_1] : memref<1x128x128xf32, #tpu.memory_space<vmem>>, vector<1x128x128xf32>
    %1 = vector.shape_cast %0 : vector<1x128x128xf32> to vector<128x128xf32>
    %c0_2 = arith.constant 0 : index
    %c0_3 = arith.constant 0 : index
    %2 = vector.load %arg2[%c0_2, %c0_3] : memref<64x128xf32, #tpu.memory_space<vmem>>, vector<64x128xf32>
    %c0_4 = arith.constant 0 : index
    %c0_5 = arith.constant 0 : index
    %3 = vector.load %arg4[%c0_4, %c0_5] : memref<16x64xf32, #tpu.memory_space<vmem>>, vector<16x64xf32>
    %cst = arith.constant dense<0.000000e+00> : vector<128x64xf32>
    %4 = tpu.matmul %1, %2, %cst {dimension_numbers = #tpu.dot_dimension_numbers<[1], [1], [0], [0], [0, 0, 1, 0], [], []>} : vector<128x128xf32>, vector<64x128xf32>, vector<128x64xf32> -> vector<128x64xf32>
    %c0_6 = arith.constant 0 : index
    %c0_7 = arith.constant 0 : index
    %5 = vector.load %arg3[%c0_6, %c0_7] : memref<1x64xf32, #tpu.memory_space<vmem>>, vector<1x64xf32>
    %6 = vector.broadcast %5 : vector<1x64xf32> to vector<128x64xf32>
    %7 = arith.addf %4, %6 : vector<128x64xf32>
    %8 = math.tanh %7 : vector<128x64xf32>
    %cst_8 = arith.constant dense<0.000000e+00> : vector<16x128xf32>
    %9 = tpu.matmul %3, %8, %cst_8 {dimension_numbers = #tpu.dot_dimension_numbers<[1], [1], [0], [0], [0, 0, 1, 0], [], []>} : vector<16x64xf32>, vector<128x64xf32>, vector<16x128xf32> -> vector<16x128xf32>
    %c0_9 = arith.constant 0 : index
    %c0_10 = arith.constant 0 : index
    %10 = vector.load %arg5[%c0_9, %c0_10] : memref<16x1xf32, #tpu.memory_space<vmem>>, vector<16x1xf32>
    %11 = vector.broadcast %10 : vector<16x1xf32> to vector<16x128xf32>
    %12 = arith.addf %9, %11 : vector<16x128xf32>
    %cst_11 = arith.constant dense<0xFF800000> : vector<16xf32>
    %13 = vector.multi_reduction <maximumf>, %12, %cst_11 [1] : vector<16x128xf32> to vector<16xf32>
    %14 = vector.shape_cast %13 : vector<16xf32> to vector<16x1xf32>
    %15 = vector.broadcast %14 : vector<16x1xf32> to vector<16x128xf32>
    %16 = arith.subf %12, %15 : vector<16x128xf32>
    %17 = math.exp %16 : vector<16x128xf32>
    %cst_12 = arith.constant dense<0.000000e+00> : vector<16xf32>
    %18 = vector.multi_reduction <add>, %17, %cst_12 [1] : vector<16x128xf32> to vector<16xf32>
    %19 = vector.shape_cast %18 : vector<16xf32> to vector<16x1xf32>
    %20 = tpu.reciprocal %19 {approx = true} : vector<16x1xf32> -> vector<16x1xf32>
    %21 = arith.mulf %19, %20 : vector<16x1xf32>
    %cst_13 = arith.constant 2.000000e+00 : f32
    %22 = vector.broadcast %cst_13 : f32 to vector<16x1xf32>
    %23 = arith.subf %22, %21 : vector<16x1xf32>
    %24 = arith.mulf %20, %23 : vector<16x1xf32>
    %25 = vector.broadcast %24 : vector<16x1xf32> to vector<16x128xf32>
    %26 = arith.mulf %17, %25 : vector<16x128xf32>
    %c0_14 = arith.constant 0 : index
    %c0_15 = arith.constant 0 : index
    %c0_16 = arith.constant 0 : index
    %27 = vector.load %arg7[%c0_14, %c0_15, %c0_16] : memref<1x16x128xf32, #tpu.memory_space<vmem>>, vector<1x16x128xf32>
    %28 = vector.shape_cast %27 : vector<1x16x128xf32> to vector<16x128xf32>
    %29 = vector.shape_cast %26 : vector<16x128xf32> to vector<1x16x128xf32>
    tpu.vector_store %arg7[%c0_14, %c0_15, %c0_16], %29 {strides = array<i32>} : memref<1x16x128xf32, #tpu.memory_space<vmem>>, vector<1x16x128xf32>,
    %cst_17 = arith.constant dense<0.000000e+00> : vector<16x128xf32>
    %30 = tpu.matmul %26, %1, %cst_17 {dimension_numbers = #tpu.dot_dimension_numbers<[1], [0], [0], [1], [0, 0, 1, 1], [], []>} : vector<16x128xf32>, vector<128x128xf32>, vector<16x128xf32> -> vector<16x128xf32>
    %c0_18 = arith.constant 0 : index
    %c0_19 = arith.constant 0 : index
    %c0_20 = arith.constant 0 : index
    %31 = vector.load %arg6[%c0_18, %c0_19, %c0_20] : memref<1x16x128xf32, #tpu.memory_space<vmem>>, vector<1x16x128xf32>
    %32 = vector.shape_cast %31 : vector<1x16x128xf32> to vector<16x128xf32>
    %33 = vector.shape_cast %30 : vector<16x128xf32> to vector<1x16x128xf32>
    tpu.vector_store %arg6[%c0_18, %c0_19, %c0_20], %33 {strides = array<i32>} : memref<1x16x128xf32, #tpu.memory_space<vmem>>, vector<1x16x128xf32>,
    return
  }
  func.func @transform_0(%arg0: i32) -> (i32, i32, i32) {
    %c0_i32 = arith.constant 0 : i32
    %c0_i32_0 = arith.constant 0 : i32
    %c0_i32_1 = arith.constant 0 : i32
    return %arg0, %c0_i32, %c0_i32_0 : i32, i32, i32
  }
  func.func @transform_1(%arg0: i32) -> (i32, i32) {
    %c0_i32 = arith.constant 0 : i32
    %c0_i32_0 = arith.constant 0 : i32
    %c0_i32_1 = arith.constant 0 : i32
    return %c0_i32, %c0_i32_0 : i32, i32
  }
  func.func @transform_2(%arg0: i32) -> (i32, i32) {
    %c0_i32 = arith.constant 0 : i32
    %c0_i32_0 = arith.constant 0 : i32
    %c0_i32_1 = arith.constant 0 : i32
    return %c0_i32, %c0_i32_0 : i32, i32
  }
  func.func @transform_3(%arg0: i32) -> (i32, i32) {
    %c0_i32 = arith.constant 0 : i32
    %c0_i32_0 = arith.constant 0 : i32
    %c0_i32_1 = arith.constant 0 : i32
    return %c0_i32, %c0_i32_0 : i32, i32
  }
  func.func @transform_4(%arg0: i32) -> (i32, i32) {
    %c0_i32 = arith.constant 0 : i32
    %c0_i32_0 = arith.constant 0 : i32
    %c0_i32_1 = arith.constant 0 : i32
    return %c0_i32, %c0_i32_0 : i32, i32
  }
  func.func @transform_5(%arg0: i32) -> (i32, i32, i32) {
    %c0_i32 = arith.constant 0 : i32
    %c0_i32_0 = arith.constant 0 : i32
    %c0_i32_1 = arith.constant 0 : i32
    return %arg0, %c0_i32, %c0_i32_0 : i32, i32, i32
  }
  func.func @transform_6(%arg0: i32) -> (i32, i32, i32) {
    %c0_i32 = arith.constant 0 : i32
    %c0_i32_0 = arith.constant 0 : i32
    %c0_i32_1 = arith.constant 0 : i32
    return %arg0, %c0_i32, %c0_i32_0 : i32, i32, i32
  }
}

</mosaic_0001>

<bundles_post_ra>
// kernel: tpu_custom_call.1
= control target key start
LH: loop header
LB: loop body
LE: loop exit
PB: predicated region body
PF: predicated region fallthrough
CT: control target
= control target key end

     0   :  { %s1321_s0 = inlined_call_operand.hbm [shape: f32[2,128,128], index: 0, kind: input, shape index: {}]   ;;  %s1322_s1 = inlined_call_operand.hbm [shape: f32[64,128], index: 1, kind: input, shape index: {}]   ;;  %s1323_s2 = inlined_call_operand.vmem [shape: f32[1,64], index: 2, kind: input, shape index: {}]   ;;  %s1324_s3 = inlined_call_operand.vmem [shape: f32[16,64], index: 3, kind: input, shape index: {}]   ;;  %s1325_s4 = inlined_call_operand.vmem [shape: f32[16,1], index: 4, kind: input, shape index: {}]   ;;  %s1326_s5 = inlined_call_operand.hbm [shape: f32[2,16,128], index: 5, kind: output, shape index: {0}]   ;;  %s1327_s6 = inlined_call_operand.hbm [shape: f32[2,16,128], index: 6, kind: output, shape index: {1}]  }
   0x1   :  { %1330 = sst [smem:[#allocation14_spill]] %s1321_s0 }
   0x2   :  { %12 = vsyncpa [#allocation3], 0 }
   0x3   :  { %14 = vsyncpa [#allocation3 + $0x1], 0 }
   0x4   :  { %15 = vsyncpa [#allocation6], 0 }
   0x5   :  { %16 = vsyncpa [#allocation4], 0 }
   0x6   :  { %18 = vsyncpa [#allocation4 + $0x1], 0 }
   0x7   :  { %19 = vsyncpa [#allocation9], 0 }
   0x8   :  { %21 = vsyncpa [#allocation9 + $0x1], 0  ;;  %s1077_s21 = smov 0   ;;  %s1079_s22 = smov 0  }
   0x9   :  { %s1081_s23 = smov 0   ;;  %s1083_s24 = smov 0  }
   0xa LB: > { %s1098_s25 = sadd.s32 4294967295, %s1034_s24   ;;  %s706_s26 = sadd.s32 4294967294, %s1034_s24   ;;  %s1034_s24 = sphi %s1083_s24, %s1343_s24   ;;  %s1030_s23 = sphi %s1081_s23, %s1342_s23   ;;  %s1026_s22 = sphi %s1079_s22, %s1341_s22   ;;  %s1022_s21 = sphi %s1077_s21, %s1340_s21  }
   0xb   : > { %p47_p0 = scmp.ne.s32.totalorder %s1026_s22, %s1022_s21  ;;  %p48_p1 = scmp.eq.s32.totalorder %s1098_s25, 0 }
   0xc   : > { %p155_p2 = scmp.eq.s32.totalorder %s1098_s25, 1  ;;  %p161_p3 = scmp.eq.s32.totalorder %s706_s26, 1 }
   0xd   : > { %p1107_p4 = por %p48_p1, %p47_p0  ;;  %p707_p5 = scmp.ge.s32.totalorder %s1034_s24, 1 }
   0xe   : > { %p1112_p6 = por %p161_p3, %p47_p0  ;;  %p194_p7 = scmp.lt.s32.totalorder %s1034_s24, 3 }
   0xf   : > { %s205_s7 = sshll.u32 %s1322_s1, 4  ;;  %s1036_s9 = smov [#allocation5]   ;;  %s206_s7 = int_to_ptr.hbm [resolvable:$true] %s205_s7 }
  0x10   : > { %p1120_p8 = pnand %p707_p5, %p194_p7  ;;  %s207_s10 = sshll.u32 %s1036_s9, 4  ;;  %s208_s10 = int_to_ptr.vmem [resolvable:$true] %s207_s10 }
  0x11   : > { %s1130_s11 = sadd.s32 1, %s1034_s24   ;;  %s1328_s12 = smov 128  }
  0x12   : > { %p773_p9 = pneg %p1120_p8  ;;  %s1329_s13 = smov 8  }
  0x13   : > { %s31_s14 = ssub.s32 %s1034_s24, %s1130_s11  ;;  %s34_s15 = sadd.s32 1, %s1030_s23 }
  0x14   : > { %p774_p10 = pnand %p773_p9, %p48_p1  ;;  %p32_p12 = scmp.eq.s32.totalorder %s31_s14, 0 }
  0x15   : > { %p41_p13 = scmp.ne.s32.totalorder %s1030_s23, %s1026_s22  ;;  %p42_p0 = scmp.eq.s32.totalorder %s1034_s24, 0 }
  0x16   : > { %776 = dma.hbm_to_vmem [thread:$0]  (!%p774_p10), %s206_s7, 1024, %s208_s10, [#allocation6], %s1328_s12, %s1328_s12, %s1329_s13  }
  0x17   : > { %s1142_s16 = scalar_select %p32_p12, %s1030_s23, %s34_s15  }
  0x18   : > { %p1146_p3 = por %p155_p2, %p41_p13  ;;  %p789_p5 = scmp.lt.s32.totalorder %s1034_s24, 2 }
  0x19   : > { %s230_s18 = sand.u32 1, %s1030_s23   ;;  %s744_s19 = sshll.u32 %s1034_s24, 7 }
  0x1a   : > { %p43_p7 = por %p42_p0, %p41_p13  ;;  %s710_s20 = sshll.u32 %s230_s18, 7 }
  0x1b   : > { %s1335_s0 = sld [smem:[#allocation14_spill]]  ;;  %s234_s9 = scalar_lea.vmem [#allocation2], %s710_s20 }
  0x1c   : > { %s242_s10 = sshll.u32 %s234_s9, 4  ;;  %p1156_p9 = pnand %p789_p5, %p43_p7  ;;  %s243_s10 = int_to_ptr.vmem [resolvable:$true] %s242_s10 }
  0x1d   : > { %s231_s15 = scalar_lea.sflag [#allocation3], %s230_s18 }
  0x1e   : > { %p906_p10 = pneg %p1156_p9 }
  0x21   : > { %s239_s30 = scalar_lea.hbm %s1335_s0, %s744_s19  ;;  %s909_s20 = scalar_lea.hbm %s1335_s0, 256 }
  0x22   : > { %s240_s7 = sshll.u32 %s239_s30, 4  ;;  %s241_s7 = int_to_ptr.hbm [resolvable:$true] %s240_s7 }
  0x23   : > { %s902_s12 = sshra.s32 %s241_s7, 4  ;;  %s903_s12 = int_to_ptr.hbm [resolvable:$true] %s902_s12 }
  0x24   : > { %s904_s13 = scalar_lea.hbm %s903_s12, 128  ;;  %p910_p0 = scmp.lt.s32.totalorder %s903_s12, %s1335_s0 }
  0x25   : > { %p905_p2 = scmp.ne.s32.totalorder %s903_s12, %s904_s13  ;;  %p911_p5 = scmp.lt.s32.totalorder %s909_s20, %s904_s13 }
  0x27   : > { %p907_p12 = pnand %p906_p10, %p905_p2  ;;  %p912_p7 = por %p911_p5, %p910_p0 }
  0x29   : > { %p908_p13 = pneg %p907_p12 }
  0x2b   : > { %p913_p11 = pnand %p912_p7, %p908_p13 }
  0x2d   : > { %916 = shalt.err (!%p913_p11)
}
  0x2e   : > { %s1337_s18 = smov 8   ;;  %s1338_s9 = smov 128  }
  0x2f   : > { %780 = dma.hbm_to_vmem [thread:$0]  (!%p1156_p9), %s241_s7, 2048, %s243_s10, %s231_s15, %s1338_s9, %s1338_s9, %s1337_s18  }
  0x30   : > { %254 = sbr.rel (%p1120_p8) target bundleno = 861 (0x35d), region = 40  ;;  %s1176_s19 = sand.u32 (!%p1120_p8), 1, %s1026_s22  }
  0x31   : > { %s714_s12 = sshll.u32 (!%p1120_p8), %s1176_s19, 7  ;;  %s257_s13 = scalar_lea.sflag (!%p1120_p8), [#allocation3], %s1176_s19 }
  0x32   : > { %s1180_s26 = scalar_lea.vmem (!%p1120_p8), [#allocation2], %s714_s12 }
  0x35   : > { %1005 = dma.done.wait (%p1107_p4), %s257_s13, 2048  }
  0x36   : > { %1007 = vsyncadd (%p1107_p4), %s257_s13, 4294965248 }
  0x37   : > { %1009 = dma.done.wait (%p48_p1), [#allocation6], 1024  }
  0x38   : > { %1011 = vsyncadd (%p48_p1), [#allocation6], 4294966272  ;;  %v323_v0 = vld [vmem:[#allocation5 + $0x38] sm:$0xff]  ;;  %v322_v1 = vld [vmem:[#allocation5 + $0x30] sm:$0xff]  ;;  %vm423_vm0 = vcmask 523264   ;;  %v1039_v62 = vmov 0  }
  0x39   : > { %748 = vmatpush.xpose.msra.mxu3 %v323_v0  ;;  %747 = vmatpush.xpose.msra.mxu2 %v323_v0  ;;  %v321_v2 = vld [vmem:[#allocation5 + $0x28] sm:$0xff]  ;;  %v320_v3 = vld [vmem:[#allocation5 + $0x20] sm:$0xff]  ;;  %v319_v4 = vld [vmem:[#allocation5 + $0x18] sm:$0xff]  ;;  %s716_s9 = sshll.u32 %s1176_s19, 4  ;;  %s558_s14 = scalar_lea.sflag [#allocation9], %s1176_s19 }
  0x3a   : > { %338 = vmatpush.xpose.msra.mxu0 %v323_v0  ;;  %v318_v5 = vld [vmem:[#allocation5 + $0x10] sm:$0xff]  ;;  %v317_v6 = vld [vmem:[#allocation5 + $0x8] sm:$0xff]  ;;  %v316_v7 = vld [vmem:[#allocation5] sm:$0xff]  ;;  %830 = vset.pattern.permute.xlu0 %v1039_v62  ;;  %s299_s12 = scalar_lea.vmem [#allocation8], %s716_s9  ;;  %s952_s18 = scalar_lea.hbm %s1327_s6, 32 }
  0x3b   : > { %v310_v8 = vld [vmem:[%s1180_s26 + $0x50] sm:$0xff]  ;;  %v315_v10 = vld [vmem:[%s1180_s26 + $0x78] sm:$0xff]  ;;  %v313_v13 = vld [vmem:[%s1180_s26 + $0x68] sm:$0xff]  ;;  %s587_s13 = sshll.u32 %s299_s12, 4  ;;  %s588_s13 = int_to_ptr.vmem [resolvable:$true] %s587_s13 }
  0x3c   : > { %v306_v9 = vld [vmem:[%s1180_s26 + $0x30] sm:$0xff]  ;;  %v311_v12 = vld [vmem:[%s1180_s26 + $0x58] sm:$0xff]  ;;  %v312_v14 = vld [vmem:[%s1180_s26 + $0x60] sm:$0xff] }
  0x3d   : > { %750 = vmatpush.xpose.msra.mxu3 %v322_v1  ;;  %749 = vmatpush.xpose.msra.mxu2 %v322_v1  ;;  %v314_v11 = vld [vmem:[%s1180_s26 + $0x70] sm:$0xff]  ;;  %v300_v15 = vld [vmem:[%s1180_s26] sm:$0xff]  ;;  %v307_v16 = vld [vmem:[%s1180_s26 + $0x38] sm:$0xff] }
  0x3e   : > { %339 = vmatpush.xpose.msra.mxu0 %v322_v1  ;;  %v309_v17 = vld [vmem:[%s1180_s26 + $0x48] sm:$0xff]  ;;  %v308_v19 = vld [vmem:[%s1180_s26 + $0x40] sm:$0xff]  ;;  %v302_v21 = vld [vmem:[%s1180_s26 + $0x10] sm:$0xff] }
  0x3f   : > { %v301_v18 = vld [vmem:[%s1180_s26 + $0x8] sm:$0xff]  ;;  %v304_v22 = vld [vmem:[%s1180_s26 + $0x20] sm:$0xff]  ;;  %v303_v23 = vld [vmem:[%s1180_s26 + $0x18] sm:$0xff] }
  0x40   : > { %v305_v20 = vld [vmem:[%s1180_s26 + $0x28] sm:$0xff]  ;;  %v1213_v33 = vld [vmem:[%s1323_s2] ss:$0 sm:$0xff]  ;;  %s745_s26 = sshll.u32 %s1098_s25, 4 }
  0x41   : > { %752 = vmatpush.xpose.msra.mxu3 %v321_v2  ;;  %751 = vmatpush.xpose.msra.mxu2 %v321_v2  ;;  %v411_v61 = vld [vmem:[%s1325_s4] sm:$0xff]  ;;  %s586_s7 = scalar_lea.hbm %s1327_s6, %s745_s26 }
  0x42   : > { %340 = vmatpush.xpose.msra.mxu0 %v321_v2  ;;  %415 = vperm.xlu0 %830, %v411_v61   ;;  %s589_s10 = sshll.u32 %s586_s7, 4  ;;  %s590_s10 = int_to_ptr.hbm [resolvable:$true] %s589_s10 }
  0x43   : > { %s946_s15 = sshra.s32 %s590_s10, 4  ;;  %s947_s15 = int_to_ptr.hbm [resolvable:$true] %s946_s15 }
  0x44   : > { %s948_s20 = scalar_lea.hbm %s947_s15, 16  ;;  %p953_p11 = scmp.lt.s32.totalorder %s947_s15, %s1327_s6 }
  0x45   : > { %754 = vmatpush.xpose.msra.mxu3 %v320_v3  ;;  %753 = vmatpush.xpose.msra.mxu2 %v320_v3  ;;  %p949_p1 = scmp.ne.s32.totalorder %s947_s15, %s948_s20  ;;  %p954_p9 = scmp.lt.s32.totalorder %s952_s18, %s948_s20 }
  0x46   : > { %341 = vmatpush.xpose.msra.mxu0 %v320_v3  ;;  %v412_v3 = vld [vmem:[%s1325_s4 + $0x8] sm:$0xff] }
  0x47   : > { %p950_p4 = pnand %p949_p1, %p1146_p3  ;;  %p955_p2 = por %p954_p9, %p953_p11 }
  0x49   : > { %756 = vmatpush.xpose.msra.mxu3 %v319_v4  ;;  %755 = vmatpush.xpose.msra.mxu2 %v319_v4  ;;  %p951_p8 = pneg %p950_p4 }
  0x4a   : > { %342 = vmatpush.xpose.msra.mxu0 %v319_v4  ;;  %420 = vperm.xlu0 %830, %v412_v3  }
  0x4b   : > { %p956_p10 = pnand %p955_p2, %p951_p8 }
  0x4d   : > { %758 = vmatpush.xpose.msra.mxu3 %v318_v5  ;;  %757 = vmatpush.xpose.msra.mxu2 %v318_v5 }
  0x4e   : > { %343 = vmatpush.xpose.msra.mxu0 %v318_v5 }
  0x51   : > { %760 = vmatpush.xpose.msra.mxu3 %v317_v6  ;;  %759 = vmatpush.xpose.msra.mxu2 %v317_v6 }
  0x52   : > { %344 = vmatpush.xpose.msra.mxu0 %v317_v6 }
  0x55   : > { %762 = vmatpush.xpose.msra.mxu3 %v316_v7  ;;  %761 = vmatpush.xpose.msra.mxu2 %v316_v7 }
  0x56   : > { %345 = vmatpush.xpose.msra.mxu0 %v316_v7 }
  0x58   : > { %376 = vmatmul.f32.vlgmr.msra.gmra.mxu3 %v310_v8  ;;  %364 = vmatmul.f32.vlgmr.msra.gmra.mxu2 %v306_v9 }
  0x59   : > { %527 = vmatpush.msrb.mxu2 %v315_v10  ;;  %346 = vmatmul.f32.vlgmr.msra.gmra.mxu0 %v300_v15 }
  0x5b   : > { %528 = vmatpush.msrb.mxu2 %v314_v11 }
  0x5d   : > { %529 = vmatpush.msrb.mxu2 %v313_v13 }
  0x5f   : > { %530 = vmatpush.msrb.mxu2 %v312_v14 }
  0x60   : > { %379 = vmatmul.f32.gmra.mxu3 %v311_v12  ;;  %367 = vmatmul.f32.gmra.mxu2 %v307_v16 }
  0x61   : > { %531 = vmatpush.msrb.mxu2 %v311_v12  ;;  %349 = vmatmul.f32.gmra.mxu0 %v301_v18  ;;  %v324_v12 = vld [vmem:[%s1324_s3] sm:$0xff] }
  0x63   : > { %532 = vmatpush.msrb.mxu2 %v310_v8 }
  0x65   : > { %533 = vmatpush.msrb.mxu2 %v309_v17 }
  0x67   : > { %534 = vmatpush.msrb.mxu2 %v308_v19 }
  0x68   : > { %382 = vmatmul.f32.gmra.mxu3 %v312_v14  ;;  %370 = vmatmul.f32.gmra.mxu2 %v308_v19 }
  0x69   : > { %535 = vmatpush.msrb.mxu2 %v307_v16  ;;  %352 = vmatmul.f32.gmra.mxu0 %v302_v21 }
  0x6b   : > { %536 = vmatpush.msrb.mxu2 %v306_v9 }
  0x6d   : > { %537 = vmatpush.msrb.mxu2 %v305_v20 }
  0x6f   : > { %538 = vmatpush.msrb.mxu2 %v304_v22 }
  0x70   : > { %385 = vmatmul.f32.gmra.mxu3 %v313_v13  ;;  %373 = vmatmul.f32.gmra.mxu2 %v309_v17  ;;  %v325_v13 = vld [vmem:[%s1324_s3 + $0x8] sm:$0xff] }
  0x71   : > { %539 = vmatpush.msrb.mxu2 %v303_v23  ;;  %355 = vmatmul.f32.gmra.mxu0 %v303_v23 }
  0x73   : > { %540 = vmatpush.msrb.mxu2 %v302_v21 }
  0x75   : > { %541 = vmatpush.msrb.mxu2 %v301_v18 }
  0x77   : > { %542 = vmatpush.msrb.mxu2 %v300_v15 }
  0x78   : > { %388 = vmatmul.f32.gmra.mxu3 %v314_v11 }
  0x79   : > { %358 = vmatmul.f32.gmra.mxu0 %v304_v22 }
  0x80   : > { %391 = vmatmul.f32.gmra.mxu3 %v315_v10 }
  0x81   : > { %361 = vmatmul.f32.gmra.mxu0 %v305_v20 }
  0xb4   : > { %v416_v14 = vpop.permute.xlu0 %415 }
  0xbc   : > { %v421_v17 = vpop.permute.xlu0 %420 }
  0xd6   : > { %v1206_v28 = vpop.f32.mrf.mxu0 }
  0xd7   : > { %v348_v8 = vadd.f32 %v1213_v33, %v1206_v28 }
  0xdb   : > { %v377_v24 = vpop.f32.mrf.mxu3  ;;  %v365_v29 = vpop.f32.mrf.mxu2 }
  0xdc   : > { %v378_v47 = vadd.f32 %v1213_v33, %v377_v24  ;;  %v366_v57 = vadd.f32 %v1213_v33, %v365_v29 }
  0xde   : > { %v1208_v31 = vpop.f32.mrf.mxu0 }
  0xdf   : > { %v351_v6 = vadd.f32 %v1213_v33, %v1208_v31 }
  0xe3   : > { %v380_v25 = vpop.f32.mrf.mxu3  ;;  %v368_v32 = vpop.f32.mrf.mxu2 }
  0xe4   : > { %v381_v44 = vadd.f32 %v1213_v33, %v380_v25  ;;  %v369_v55 = vadd.f32 %v1213_v33, %v368_v32 }
  0xe6   : > { %v353_v37 = vpop.f32.mrf.mxu0 }
  0xe7   : > { %v354_v4 = vadd.f32 %v1213_v33, %v353_v37 }
  0xeb   : > { %v383_v26 = vpop.f32.mrf.mxu3  ;;  %v371_v39 = vpop.f32.mrf.mxu2 }
  0xec   : > { %v384_v41 = vadd.f32 %v1213_v33, %v383_v26  ;;  %v372_v52 = vadd.f32 %v1213_v33, %v371_v39 }
  0xee   : > { %v356_v43 = vpop.f32.mrf.mxu0 }
  0xef   : > { %v357_v2 = vadd.f32 %v1213_v33, %v356_v43 }
  0xf3   : > { %v386_v27 = vpop.f32.mrf.mxu3  ;;  %v374_v46 = vpop.f32.mrf.mxu2 }
  0xf4   : > { %v387_v38 = vadd.f32 %v1213_v33, %v386_v27  ;;  %v375_v49 = vadd.f32 %v1213_v33, %v374_v46 }
  0xf6   : > { %v359_v50 = vpop.f32.mrf.mxu0 }
  0xf7   : > { %v360_v63 = vadd.f32 %v1213_v33, %v359_v50 }
  0xfb   : > { %v389_v30 = vpop.f32.mrf.mxu3 }
  0xfc   : > { %v390_v36 = vadd.f32 %v1213_v33, %v389_v30 }
  0xfe   : > { %v362_v56 = vpop.f32.mrf.mxu0 }
  0xff   : > { %v363_v59 = vadd.f32 %v1213_v33, %v362_v56 }
 0x103   : > { %v392_v34 = vpop.f32.mrf.mxu3 }
 0x104   : > { %v393_v35 = vadd.f32 %v1213_v33, %v392_v34 }
 0x106   : > { %832 = vtanh.f32 %v393_v35 }
 0x107   : > { %834 = vtanh.f32 %v390_v36 }
 0x108   : > { %836 = vtanh.f32 %v387_v38 }
 0x109   : > { %838 = vtanh.f32 %v384_v41 }
 0x10a   : > { %840 = vtanh.f32 %v381_v44 }
 0x10b   : > { %842 = vtanh.f32 %v378_v47 }
 0x10c   : > { %v833_v40 = vpop.eup %832  ;;  %844 = vtanh.f32 %v375_v49 }
 0x10d   : > { %718 = vmatpush.xpose.msk.msra.mxu1 %vm423_vm0, %v833_v40  ;;  %v835_v42 = vpop.eup %834  ;;  %846 = vtanh.f32 %v372_v52 }
 0x10e   : > { %v837_v45 = vpop.eup %836  ;;  %848 = vtanh.f32 %v369_v55 }
 0x10f   : > { %v839_v48 = vpop.eup %838  ;;  %850 = vtanh.f32 %v366_v57 }
 0x110   : > { %v841_v51 = vpop.eup %840  ;;  %852 = vtanh.f32 %v363_v59 }
 0x111   : > { %719 = vmatpush.xpose.msk.msra.mxu1 %vm423_vm0, %v835_v42  ;;  %v843_v53 = vpop.eup %842  ;;  %854 = vtanh.f32 %v360_v63 }
 0x112   : > { %v845_v54 = vpop.eup %844  ;;  %856 = vtanh.f32 %v357_v2 }
 0x113   : > { %v847_v58 = vpop.eup %846  ;;  %858 = vtanh.f32 %v354_v4 }
 0x114   : > { %v849_v60 = vpop.eup %848  ;;  %860 = vtanh.f32 %v351_v6 }
 0x115   : > { %720 = vmatpush.xpose.msk.msra.mxu1 %vm423_vm0, %v837_v45  ;;  %v851_v0 = vpop.eup %850  ;;  %862 = vtanh.f32 %v348_v8 }
 0x116   : > { %v853_v1 = vpop.eup %852 }
 0x117   : > { %v855_v5 = vpop.eup %854 }
 0x118   : > { %v857_v7 = vpop.eup %856 }
 0x119   : > { %721 = vmatpush.xpose.msk.msra.mxu1 %vm423_vm0, %v839_v48  ;;  %v859_v9 = vpop.eup %858 }
 0x11a   : > { %v861_v10 = vpop.eup %860 }
 0x11b   : > { %v863_v11 = vpop.eup %862 }
 0x11d   : > { %722 = vmatpush.xpose.msk.msra.mxu1 %vm423_vm0, %v841_v51 }
 0x121   : > { %723 = vmatpush.xpose.msk.msra.mxu1 %vm423_vm0, %v843_v53 }
 0x125   : > { %724 = vmatpush.xpose.msk.msra.mxu1 %vm423_vm0, %v845_v54 }
 0x129   : > { %725 = vmatpush.xpose.msk.msra.mxu1 %vm423_vm0, %v847_v58 }
 0x12d   : > { %726 = vmatpush.xpose.msk.msra.mxu1 %vm423_vm0, %v849_v60 }
 0x131   : > { %727 = vmatpush.xpose.msk.msra.mxu1 %vm423_vm0, %v851_v0 }
 0x135   : > { %728 = vmatpush.xpose.msk.msra.mxu1 %vm423_vm0, %v853_v1 }
 0x139   : > { %729 = vmatpush.xpose.msk.msra.mxu1 %vm423_vm0, %v855_v5 }
 0x13d   : > { %730 = vmatpush.xpose.msk.msra.mxu1 %vm423_vm0, %v857_v7 }
 0x141   : > { %731 = vmatpush.xpose.msk.msra.mxu1 %vm423_vm0, %v859_v9 }
 0x145   : > { %732 = vmatpush.xpose.msk.msra.mxu1 %vm423_vm0, %v861_v10 }
 0x149   : > { %733 = vmatpush.xpose.msk.msra.mxu1 %vm423_vm0, %v863_v11 }
 0x14c   : > { %734 = vmatmul.msk.f32.vlgmr.msra.gmra.mxu1 %vm423_vm0, %v324_v12 }
 0x154   : > { %735 = vmatmul.msk.f32.gmra.mxu1 %vm423_vm0, %v325_v13 }
 0x1c9   : > { %v495_v15 = vpop.f32.mrf.mxu1 }
 0x1ca   : > { %v496_v16 = vadd.f32 %v495_v15, %v416_v14 }
 0x1cc   : > { %501 = vmax.xlane.f32.xlu1 %v496_v16 }
 0x1d1   : > { %v498_v18 = vpop.f32.mrf.mxu1 }
 0x1d2   : > { %v499_v19 = vadd.f32 %v498_v18, %v421_v17 }
 0x1d4   : > { %503 = vmax.xlane.f32.xlu1 %v499_v19 }
 0x23f   : > { %v502_v20 = vpop.xlane.xlu1 %501 }
 0x240   : > { %v505_v21 = vsub.f32 %v496_v16, %v502_v20 }
 0x242   : > { %v507_v22 = vmul.f32 1.442695, %v505_v21 }
 0x244   : > { %864 = vpow2.f32 %v507_v22 }
 0x247   : > { %v504_v23 = vpop.xlane.xlu1 %503 }
 0x248   : > { %v506_v24 = vsub.f32 %v499_v19, %v504_v23 }
 0x24a   : > { %v865_v25 = vpop.eup %864  ;;  %v509_v26 = vmul.f32 1.442695, %v506_v24 }
 0x24b   : > { %511 = vadd.xlane.f32.xlu2 %v865_v25 }
 0x24c   : > { %866 = vpow2.f32 %v509_v26 }
 0x252   : > { %v867_v27 = vpop.eup %866 }
 0x253   : > { %513 = vadd.xlane.f32.xlu2 %v867_v27 }
 0x2be   : > { %v512_v28 = vpop.xlane.xlu2 %511 }
 0x2bf   : > { %868 = vrcp.f32 %v512_v28 }
 0x2c5   : > { %v869_v29 = vpop.eup %868 }
 0x2c6   : > { %v517_v30 = vmul.f32 %v869_v29, %v512_v28  ;;  %v514_v31 = vpop.xlane.xlu2 %513 }
 0x2c7   : > { %870 = vrcp.f32 %v514_v31 }
 0x2c8   : > { %v519_v32 = vsub.f32 2.0, %v517_v30 }
 0x2ca   : > { %v521_v33 = vmul.f32 %v869_v29, %v519_v32 }
 0x2cc   : > { %v523_v34 = vmul.f32 %v865_v25, %v521_v33 }
 0x2cd   : > { %v871_v35 = vpop.eup %870 }
 0x2ce   : > { %v518_v36 = vmul.f32 %v871_v35, %v514_v31  ;;  %543 = vmatmul.f32.vlgmr.msrb.gmra.mxu2 %v523_v34  ;;  %525 = vst [vmem:[%s299_s12] sm:$0xff] %v523_v34 }
 0x2d0   : > { %v520_v37 = vsub.f32 2.0, %v518_v36 }
 0x2d2   : > { %v522_v38 = vmul.f32 %v871_v35, %v520_v37 }
 0x2d4   : > { %v524_v39 = vmul.f32 %v867_v27, %v522_v38 }
 0x2d6   : > { %546 = vmatmul.f32.gmra.mxu2 %v524_v39  ;;  %526 = vst [vmem:[%s299_s12 + $0x8] sm:$0xff] %v524_v39 }
 0x2d7   : > { %959 = shalt.err (!%p956_p10)
}
 0x2d8   : > { %s1040_s27 = smov 128   ;;  %s1041_s8 = smov 8  }
 0x2d9   : > { %770 = dma.vmem_to_hbm [thread:$0]  (%p1146_p3), %s588_s13, 256, %s590_s10, %s558_s14, %s1040_s27, %s1040_s27, %s1041_s8  }
 0x2da   : > { %s292_s7 = scalar_lea.vmem [#allocation7], %s716_s9  ;;  %s569_s29 = scalar_lea.hbm %s1326_s5, %s745_s26 }
 0x2db   : > { %s570_s30 = sshll.u32 %s292_s7, 4  ;;  %s572_s18 = sshll.u32 %s569_s29, 4  ;;  %s571_s30 = int_to_ptr.vmem [resolvable:$true] %s570_s30  ;;  %s573_s18 = int_to_ptr.hbm [resolvable:$true] %s572_s18 }
 0x2dc   : > { %s553_s25 = scalar_lea.sflag [#allocation4], %s1176_s19  ;;  %s974_s12 = sshra.s32 %s573_s18, 4  ;;  %s975_s12 = int_to_ptr.hbm [resolvable:$true] %s974_s12 }
 0x2dd   : > { %s976_s0 = scalar_lea.hbm %s975_s12, 16  ;;  %s980_s10 = scalar_lea.hbm %s1326_s5, 32 }
 0x2de   : > { %p977_p12 = scmp.ne.s32.totalorder %s975_s12, %s976_s0  ;;  %p981_p5 = scmp.lt.s32.totalorder %s975_s12, %s1326_s5 }
 0x2df   : > { %p982_p7 = scmp.lt.s32.totalorder %s980_s10, %s976_s0 }
 0x2e0   : > { %p978_p13 = pnand %p977_p12, %p1146_p3 }
 0x2e1   : > { %p983_p1 = por %p982_p7, %p981_p5 }
 0x2e2   : > { %p979_p0 = pneg %p978_p13 }
 0x2e4   : > { %p984_p4 = pnand %p983_p1, %p979_p0 }
 0x351   : > { %v544_v40 = vpop.f32.mrf.mxu2 }
 0x352   : > { %550 = vst [vmem:[%s292_s7] sm:$0xff] %v544_v40 }
 0x359   : > { %v547_v41 = vpop.f32.mrf.mxu2 }
 0x35a   : > { %551 = vst [vmem:[%s292_s7 + $0x8] sm:$0xff] %v547_v41 }
 0x35b   : > { %987 = shalt.err (!%p984_p4)
}
 0x35c   : > { %769 = dma.vmem_to_hbm [thread:$0]  (%p1146_p3), %s571_s30, 256, %s573_s18, %s553_s25, %s1040_s27, %s1040_s27, %s1041_s8  }
 0x35d PF: > { %s604_s19 = sand.u32 1, %s1022_s21   ;;  %p1339_p8 = scmp.ge.s32.totalorder %s1034_s24, 2 }
 0x35e   : > { %s605_s7 = scalar_lea.sflag [#allocation4], %s604_s19 }
 0x35f   : > { %p782_p11 = pnand %p1339_p8, %p1112_p6 }
 0x361   : > { %p783_p9 = pneg %p782_p11 }
 0x363   : > { %1013 = dma.done.wait (%p783_p9), %s605_s7, 256  }
 0x364   : > { %1015 = vsyncadd (%p783_p9), %s605_s7, 4294967040  ;;  %s615_s0 = scalar_lea.sflag [#allocation9], %s604_s19 }
 0x365   : > { %1017 = dma.done.wait (%p783_p9), %s615_s0, 256  }
 0x366   : > { %1019 = vsyncadd (%p783_p9), %s615_s0, 4294967040  ;;  %p24_p3 = scmp.ge.s32.totalorder %s1130_s11, 4   ;;  %s1340_s21 = smov %s1026_s22 }
 0x367   : > { %s1341_s22 = smov %s1030_s23  ;;  %s1342_s23 = smov %s1142_s16 }
 0x368   : > { %s1343_s24 = smov %s1130_s11  ;;  %26 = sbr.rel (!%p24_p3) target bundleno = 10 (0xa), region = 106 }
 0x36d   :  { %621 = vsyncpa [#allocation3], 1 }
 0x36e   :  { %623 = vsyncpa [#allocation3 + $0x1], 1 }
 0x36f   :  { %624 = vsyncpa [#allocation6], 1 }
 0x370   :  { %625 = vsyncpa [#allocation4], 1 }
 0x371   :  { %627 = vsyncpa [#allocation4 + $0x1], 1 }
 0x372   :  { %628 = vsyncpa [#allocation9], 1 }
 0x373   :  { %630 = vsyncpa [#allocation9 + $0x1], 1 }

</bundles_post_ra>
